<compile_context>
chip_gen: v5e
topology: v5e:2x2
jax: 0.10.0
libtpu: 0.0.40
codegen_flags: <defaults>
</compile_context>

<pallas_src>
import functools
import math

import jax
import jax.numpy as jnp
from jax.experimental import pallas as pl
from jax.experimental.pallas import tpu as pltpu


# ----------------------------------------------------------------------------
# helpers
# ----------------------------------------------------------------------------
def _round_up(x, m):
    return ((x + m - 1) // m) * m


def _pick_tile(dim, target, mult):
    """Tile size (multiple of `mult`, <= max(target, mult)) and padded dim."""
    t = min(target, _round_up(dim, mult))
    t = max(t, mult)
    return t, _round_up(dim, t)


def _sublane_mult(dtype):
    # 8 rows per sublane tile for 4-byte dtypes, 16 for bf16, 32 for int8/fp8.
    return max(8, 32 // jnp.dtype(dtype).itemsize)


@functools.lru_cache(maxsize=1)
def _vmem_limit_bytes():
    """Generation-aware scoped-VMEM budget (~3/4 of physical, clamped safe)."""
    try:
        cap = int(getattr(pltpu.get_tpu_info(), "vmem_capacity_bytes"))
        limit = (cap * 3) // 4
    except Exception:
        limit = 48 * 1024 * 1024          # safe everywhere (v7x has 64 MiB)
    # 48 MiB floor (v7x-safe), 100 MiB ceiling (v5e/v6e: 128 MiB physical).
    return int(min(max(limit, 48 * 1024 * 1024), 100 * 1024 * 1024))


# ----------------------------------------------------------------------------
# Pallas kernels
# ----------------------------------------------------------------------------
def _xa_kernel(x_ref, at_ref, z_ref):
    """Prologue: z = x @ A^T (f32 output, rank padded to 128 lanes)."""
    @pl.when(pl.program_id(1) == 0)
    def _():
        z_ref[...] = jnp.zeros_like(z_ref)
    z_ref[...] += jnp.dot(x_ref[...], at_ref[...],
                          preferred_element_type=jnp.float32)


def _lora_singlek_kernel(x_ref, wt_ref, b_ref, z_ref, bt_ref, o_ref):
    """Whole-K tile: out = x @ W^T + b + z @ (scaling*B^T). No carried state."""
    acc = jnp.dot(x_ref[...], wt_ref[...], preferred_element_type=jnp.float32)
    lora = jnp.dot(z_ref[...].astype(bt_ref.dtype), bt_ref[...],
                   preferred_element_type=jnp.float32)
    o_ref[...] = (acc + b_ref[...] + lora).astype(o_ref.dtype)


def _lora_multik_kernel(x_ref, wt_ref, b_ref, z_ref, bt_ref, o_ref, acc_ref):
    """K-tiled variant: f32 VMEM accumulator, bias + LoRA epilogue at k==last."""
    k = pl.program_id(2)

    @pl.when(k == 0)
    def _():
        acc_ref[...] = jnp.zeros_like(acc_ref)

    acc_ref[...] += jnp.dot(x_ref[...], wt_ref[...],
                            preferred_element_type=jnp.float32)

    @pl.when(k == pl.num_programs(2) - 1)
    def _():
        lora = jnp.dot(z_ref[...].astype(bt_ref.dtype), bt_ref[...],
                       preferred_element_type=jnp.float32)
        o_ref[...] = (acc_ref[...] + b_ref[...] + lora).astype(o_ref.dtype)


# ----------------------------------------------------------------------------
# One-time parameter preparation: transpose, fold scaling, pad to tile grid.
# ----------------------------------------------------------------------------
def prepare_lora_linear(W, b, A, Bm, scaling, *, compute_dtype=jnp.bfloat16,
                        tn_target=512, tk_cap=2048):
    """W: [Dout, Din]; b: [Dout]; A: [r, Din]; Bm: [Dout, r]."""
    Dout, Din = W.shape
    r = A.shape[0]
    cdt = jnp.dtype(compute_dtype)

    tn, N_pad = _pick_tile(Dout, tn_target, 128)
    K128 = _round_up(Din, 128)
    if K128 <= tk_cap:
        tk, K_pad = K128, K128            # whole-K: single pass, no k grid axis
    else:
        tk, K_pad = _pick_tile(Din, tk_cap, 128)
    r_pad = _round_up(r, 128)             # lane-dense z intermediate

    wt = jnp.zeros((K_pad, N_pad), cdt).at[:Din, :Dout].set(W.T.astype(cdt))
    at = jnp.zeros((K_pad, r_pad), cdt).at[:Din, :r].set(A.T.astype(cdt))
    # LoRA scaling folded into B^T; kept in the compute dtype (MXU-facing).
    bt = jnp.zeros((r_pad, N_pad), cdt).at[:r, :Dout].set(
        (float(scaling) * Bm.T).astype(cdt))
    b2 = jnp.zeros((1, N_pad), jnp.float32).at[0, :Dout].set(
        b.astype(jnp.float32))

    return dict(wt=wt, at=at, bt=bt, b=b2, Din=Din, Dout=Dout,
                tn=tn, tk=tk, N_pad=N_pad, K_pad=K_pad, r_pad=r_pad, cdt=cdt)


# ----------------------------------------------------------------------------
# Wrapper: (optionally) pads x, launches the prologue + main kernels.
# ----------------------------------------------------------------------------
def lora_linear(x2d, prep, *, tm_target=512, out_dtype=None):
    """x2d: [M, Din] -> [M, Dout]."""
    M, Din = x2d.shape
    assert Din == prep["Din"], "input feature dim mismatch"
    K_pad, N_pad = prep["K_pad"], prep["N_pad"]
    tk, tn, r_pad, cdt = prep["tk"], prep["tn"], prep["r_pad"], prep["cdt"]
    out_dt = jnp.dtype(out_dtype) if out_dtype is not None else x2d.dtype

    tm, M_pad = _pick_tile(M, tm_target, _sublane_mult(cdt))
    gm, gn, gk = M_pad // tm, N_pad // tn, K_pad // tk
    vmem_limit = _vmem_limit_bytes()

    # Fast path: skip the per-call zero-pad copy when already tile-aligned.
    if M_pad == M and K_pad == Din:
        xp = x2d if x2d.dtype == cdt else x2d.astype(cdt)
    else:
        xp = jnp.zeros((M_pad, K_pad), cdt).at[:M, :Din].set(x2d.astype(cdt))

    # Prologue: z = x @ A^T (f32). Keeping this out of the main kernel means
    # the main kernel's j axis carries no state and can be "parallel".
    z = pl.pallas_call(
        _xa_kernel,
        out_shape=jax.ShapeDtypeStruct((M_pad, r_pad), jnp.float32),
        grid=(gm, gk),
        in_specs=[pl.BlockSpec((tm, tk), lambda i, k: (i, k)),
                  pl.BlockSpec((tk, r_pad), lambda i, k: (k, 0))],
        out_specs=pl.BlockSpec((tm, r_pad), lambda i, k: (i, 0)),
        compiler_params=pltpu.CompilerParams(
            dimension_semantics=("parallel", "arbitrary"),
            vmem_limit_bytes=vmem_limit),
    )(xp, prep["at"])

    # TODO(synk): on v5e add pipeline_mode=pl.Buffered(3) to the wt BlockSpec
    # (slowest HBM; the weight stream is the exposed bottleneck there).
    if gk == 1:
        out = pl.pallas_call(
            _lora_singlek_kernel,
            out_shape=jax.ShapeDtypeStruct((M_pad, N_pad), out_dt),
            grid=(gm, gn),
            in_specs=[
                pl.BlockSpec((tm, tk), lambda i, j: (i, 0)),        # x
                pl.BlockSpec((tk, tn), lambda i, j: (0, j)),        # W^T
                pl.BlockSpec((1, tn), lambda i, j: (0, j)),         # bias
                pl.BlockSpec((tm, r_pad), lambda i, j: (i, 0)),     # z
                pl.BlockSpec((r_pad, tn), lambda i, j: (0, j)),     # scaled B^T
            ],
            out_specs=pl.BlockSpec((tm, tn), lambda i, j: (i, j)),
            compiler_params=pltpu.CompilerParams(
                dimension_semantics=("parallel", "parallel"),
                vmem_limit_bytes=vmem_limit),
        )(xp, prep["wt"], prep["b"], z, prep["bt"])
    else:
        out = pl.pallas_call(
            _lora_multik_kernel,
            out_shape=jax.ShapeDtypeStruct((M_pad, N_pad), out_dt),
            grid=(gm, gn, gk),
            in_specs=[
                pl.BlockSpec((tm, tk), lambda i, j, k: (i, k)),     # x
                pl.BlockSpec((tk, tn), lambda i, j, k: (k, j)),     # W^T
                pl.BlockSpec((1, tn), lambda i, j, k: (0, j)),      # bias
                pl.BlockSpec((tm, r_pad), lambda i, j, k: (i, 0)),  # z
                pl.BlockSpec((r_pad, tn), lambda i, j, k: (0, j)),  # scaled B^T
            ],
            out_specs=pl.BlockSpec((tm, tn), lambda i, j, k: (i, j)),
            scratch_shapes=[pltpu.VMEM((tm, tn), jnp.float32)],
            compiler_params=pltpu.CompilerParams(
                dimension_semantics=("parallel", "parallel", "arbitrary"),
                vmem_limit_bytes=vmem_limit),
        )(xp, prep["wt"], prep["b"], z, prep["bt"])

    if M_pad == M and N_pad == prep["Dout"]:
        return out
    return out[:M, :prep["Dout"]]


# ----------------------------------------------------------------------------
# Parameter init (deterministic, shapes per LoRALinear.__init__)
# ----------------------------------------------------------------------------
def init_lora_linear_params(key, in_features, out_features, rank):
    kw, kb, ka, kbl = jax.random.split(key, 4)
    bound = 1.0 / math.sqrt(in_features)
    W = jax.random.uniform(kw, (out_features, in_features), jnp.float32,
                           -bound, bound)
    b = jax.random.uniform(kb, (out_features,), jnp.float32, -bound, bound)
    A = jax.random.uniform(ka, (rank, in_features), jnp.float32, -bound, bound)
    # torch zero-inits lora_B; small nonzero values here so the LoRA branch
    # contributes numerically in this synthetic check.
    Bm = 0.01 * jax.random.normal(kbl, (out_features, rank), jnp.float32)
    return W, b, A, Bm


# ----------------------------------------------------------------------------
# Minimal layer-0 attention forward using the LoRA projections.
# TODO(synk): base Transformer internals (embeddings, other layers, KV cache,
# speaker conditioning) are not provided; SDPA below is plain-JAX glue at demo
# shapes — flash-attention Pallas tiling with the wo-LoRA epilogue fused into
# its output tile is the follow-up for real sequence lengths.
# ----------------------------------------------------------------------------
def attention_with_lora_forward(x, qkv_prep, o_prep, n_head):
    B, T, D = x.shape
    head_dim = D // n_head
    x2d = x.reshape(B * T, D)

    qkv = lora_linear(x2d, qkv_prep)                                  # [M, 3D]
    qkv = qkv.reshape(B, T, 3, n_head, head_dim)
    q, k, v = qkv[:, :, 0], qkv[:, :, 1], qkv[:, :, 2]                # [B,T,H,hd]
    q = q.transpose(0, 2, 1, 3)
    k = k.transpose(0, 2, 1, 3)
    v = v.transpose(0, 2, 1, 3)                                       # [B,H,T,hd]

    scores = jnp.einsum("bhqd,bhkd->bhqk", q, k) / math.sqrt(head_dim)
    causal = jnp.tril(jnp.ones((T, T), dtype=bool))
    scores = jnp.where(causal[None, None], scores, -jnp.inf)
    attn = jax.nn.softmax(scores, axis=-1)
    ctx = jnp.einsum("bhqk,bhkd->bhqd", attn, v)                      # [B,H,T,hd]
    ctx = ctx.transpose(0, 2, 1, 3).reshape(B * T, D)

    out = lora_linear(ctx, o_prep)                                    # [M, D]
    return out.reshape(B, T, D)


# Pure-JAX reference for the fused LoRA linear (high-precision dots).
# TODO(synk): training-mode lora_dropout (random mask on x) not implemented
# (eval semantics: dropout == identity).
def lora_linear_ref(x2d, W, b, A, Bm, scaling):
    hp = jax.lax.Precision.HIGHEST
    base = jnp.dot(x2d, W.T, precision=hp) + b
    lora = jnp.dot(jnp.dot(x2d, A.T, precision=hp), Bm.T, precision=hp)
    return base + scaling * lora


if __name__ == "__main__":
    # Small config consistent with the module: hidden=32, heads=4, seq=8, B=2
    B, T, D = 2, 8, 32
    n_head = 4
    rank, alpha = 8, 16
    scaling = alpha / rank

    key = jax.random.PRNGKey(0)
    kx, kqkv, ko, kbig = jax.random.split(key, 4)
    x = jax.random.normal(kx, (B, T, D), jnp.float32)   # layout: [B, T, D]

    Wqkv, bqkv, Aqkv, Bqkv = init_lora_linear_params(kqkv, D, 3 * D, rank)
    Wo, bo, Ao, Bo = init_lora_linear_params(ko, D, D, rank)
    qkv_prep = prepare_lora_linear(Wqkv, bqkv, Aqkv, Bqkv, scaling)  # bf16 MXU
    o_prep = prepare_lora_linear(Wo, bo, Ao, Bo, scaling)            # bf16 MXU

    # End-to-end Pallas-backed layer-0 attention forward.
    out = attention_with_lora_forward(x, qkv_prep, o_prep, n_head)
    out = jax.block_until_ready(out)

    x2d = x.reshape(B * T, D)
    want = lora_linear_ref(x2d, Wqkv, bqkv, Aqkv, Bqkv, scaling)

    # Check 1: f32 compute path (tight tolerance; verifies kernel structure).
    qkv_prep_f32 = prepare_lora_linear(Wqkv, bqkv, Aqkv, Bqkv, scaling,
                                       compute_dtype=jnp.float32)
    got_f32 = lora_linear(x2d, qkv_prep_f32)
    assert jnp.allclose(got_f32, want, atol=1e-3, rtol=1e-3), "f32 LoRA mismatch"

    # Check 2: bf16 default path (same prep the attention forward uses).
    got_bf16 = lora_linear(x2d, qkv_prep)
    assert jnp.allclose(got_bf16, want, atol=2.5e-2, rtol=2.5e-2), \
        "bf16 LoRA mismatch"

    # Check 3: multi-tile grid, whole-K single-pass kernel (gm/gn > 1, padded
    # M and N, z reuse across the parallel j axis, output slicing).
    kw2, kx2 = jax.random.split(kbig)
    Din2, Dout2, M2 = 384, 640, 272
    W2, b2, A2, B2 = init_lora_linear_params(kw2, Din2, Dout2, rank)
    x2 = jax.random.normal(kx2, (M2, Din2), jnp.float32)
    want2 = lora_linear_ref(x2, W2, b2, A2, B2, scaling)

    prep2 = prepare_lora_linear(W2, b2, A2, B2, scaling, tn_target=512)
    got2 = jax.block_until_ready(lora_linear(x2, prep2, tm_target=256))
    assert jnp.allclose(got2, want2, atol=2.5e-2, rtol=2.5e-2), \
        "tiled (whole-K) LoRA mismatch"

    # Check 4: forced K tiling (gk > 1) exercises the multi-K accumulator path.
    prep3 = prepare_lora_linear(W2, b2, A2, B2, scaling,
                                tn_target=256, tk_cap=128)
    got3 = jax.block_until_ready(lora_linear(x2, prep3, tm_target=128))
    assert jnp.allclose(got3, want2, atol=2.5e-2, rtol=2.5e-2), \
        "tiled (multi-K) LoRA mismatch"

    print("KERNEL_OK")
</pallas_src>

<mosaic_0001>
module attributes {stable_mosaic.version = 11 : i64} {
  func.func @_xa_kernel(%arg0: i32, %arg1: i32, %arg2: memref<16x128xbf16, #tpu.memory_space<vmem>>, %arg3: memref<128x128xbf16, #tpu.memory_space<vmem>>, %arg4: memref<16x128xf32, #tpu.memory_space<vmem>>) attributes {dimension_semantics = [#tpu.dimension_semantics<parallel>, #tpu.dimension_semantics<arbitrary>], iteration_bounds = array<i64: 1, 1>, scalar_prefetch = 0 : i64, scratch_operands = 0 : i64, tpu.core_type = #tpu.core_type<tc>, window_params = [{transform_indices = @transform_0, window_bounds = array<i64: 16, 128>}, {transform_indices = @transform_1, window_bounds = array<i64: 128, 128>}, {transform_indices = @transform_2, window_bounds = array<i64: 16, 128>}]} {
    %c0_i32 = arith.constant 0 : i32
    %0 = arith.cmpi eq, %arg1, %c0_i32 : i32
    %1 = arith.extui %0 : i1 to i32
    %c0_i32_0 = arith.constant 0 : i32
    %2 = arith.cmpi ne, %1, %c0_i32_0 : i32
    scf.if %2 {
      %cst_8 = arith.constant 0.000000e+00 : f32
      %9 = vector.broadcast %cst_8 : f32 to vector<16x128xf32>
      %c0_9 = arith.constant 0 : index
      %c0_10 = arith.constant 0 : index
      %10 = vector.load %arg4[%c0_9, %c0_10] : memref<16x128xf32, #tpu.memory_space<vmem>>, vector<16x128xf32>
      tpu.vector_store %arg4[%c0_9, %c0_10], %9 {strides = array<i32>} : memref<16x128xf32, #tpu.memory_space<vmem>>, vector<16x128xf32>,
    } else {
    }
    %c0 = arith.constant 0 : index
    %c0_1 = arith.constant 0 : index
    %3 = vector.load %arg4[%c0, %c0_1] : memref<16x128xf32, #tpu.memory_space<vmem>>, vector<16x128xf32>
    %c0_2 = arith.constant 0 : index
    %c0_3 = arith.constant 0 : index
    %4 = vector.load %arg2[%c0_2, %c0_3] : memref<16x128xbf16, #tpu.memory_space<vmem>>, vector<16x128xbf16>
    %c0_4 = arith.constant 0 : index
    %c0_5 = arith.constant 0 : index
    %5 = vector.load %arg3[%c0_4, %c0_5] : memref<128x128xbf16, #tpu.memory_space<vmem>>, vector<128x128xbf16>
    %cst = arith.constant dense<0.000000e+00> : vector<16x128xf32>
    %6 = tpu.matmul %4, %5, %cst {dimension_numbers = #tpu.dot_dimension_numbers<[1], [0], [0], [1], [0, 0, 1, 1], [], []>} : vector<16x128xbf16>, vector<128x128xbf16>, vector<16x128xf32> -> vector<16x128xf32>
    %7 = arith.addf %3, %6 : vector<16x128xf32>
    %c0_6 = arith.constant 0 : index
    %c0_7 = arith.constant 0 : index
    %8 = vector.load %arg4[%c0_6, %c0_7] : memref<16x128xf32, #tpu.memory_space<vmem>>, vector<16x128xf32>
    tpu.vector_store %arg4[%c0_6, %c0_7], %7 {strides = array<i32>} : memref<16x128xf32, #tpu.memory_space<vmem>>, vector<16x128xf32>,
    return
  }
  func.func @transform_0(%arg0: i32, %arg1: i32) -> (i32, i32) {
    %c0_i32 = arith.constant 0 : i32
    return %arg0, %arg1 : i32, i32
  }
  func.func @transform_1(%arg0: i32, %arg1: i32) -> (i32, i32) {
    %c0_i32 = arith.constant 0 : i32
    %c0_i32_0 = arith.constant 0 : i32
    return %arg1, %c0_i32 : i32, i32
  }
  func.func @transform_2(%arg0: i32, %arg1: i32) -> (i32, i32) {
    %c0_i32 = arith.constant 0 : i32
    %c0_i32_0 = arith.constant 0 : i32
    return %arg0, %c0_i32 : i32, i32
  }
}

</mosaic_0001>

<bundles_post_ra>
// kernel: tpu_custom_call.1
= control target key start
LH: loop header
LB: loop body
LE: loop exit
PB: predicated region body
PF: predicated region fallthrough
CT: control target
= control target key end

     0   :  { %7 = vsyncpa [#allocation3], 0  ;;  %s324_s0 = inlined_call_operand.hbm [shape: bf16[16,128], index: 0, kind: input, shape index: {}]   ;;  %s325_s1 = inlined_call_operand.hbm [shape: bf16[128,128], index: 1, kind: input, shape index: {}]   ;;  %s326_s2 = inlined_call_operand.hbm [shape: f32[16,128], index: 2, kind: output, shape index: {}]  }
   0x1   :  { %8 = vsyncpa [#allocation6], 0 }
   0x2   :  { %9 = vsyncpa [#allocation4], 0  ;;  %s14_s11 = sshll.u32 %s324_s0, 4  ;;  %s293_s12 = smov [#allocation2]   ;;  %s15_s11 = int_to_ptr.hbm [resolvable:$true] %s14_s11 }
   0x3   :  { %s16_s13 = sshll.u32 %s293_s12, 4  ;;  %s27_s16 = sshll.u32 %s325_s1, 4  ;;  %s17_s13 = int_to_ptr.vmem [resolvable:$true] %s16_s13  ;;  %s28_s16 = int_to_ptr.hbm [resolvable:$true] %s27_s16 }
   0x4   :  { %s294_s17 = smov 64   ;;  %s295_s18 = smov 4  }
   0x5   :  { %22 = dma.hbm_to_vmem [thread:$0]  %s15_s11, 128, %s17_s13, [#allocation3], %s294_s17, %s294_s17, %s295_s18  }
   0x6   :  { %s296_s19 = smov [#allocation5]  }
   0x7   :  { %s29_s20 = sshll.u32 %s296_s19, 4  ;;  %s30_s20 = int_to_ptr.vmem [resolvable:$true] %s29_s20 }
   0x8   :  { %35 = dma.hbm_to_vmem [thread:$0]  %s28_s16, 1024, %s30_s20, [#allocation6], %s294_s17, %s294_s17, %s295_s18  }
   0x9   :  { %287 = dma.done.wait [#allocation3], 128  }
   0xa   :  { %288 = vsyncadd [#allocation3], 4294967168 }
   0xb   :  { %289 = dma.done.wait [#allocation6], 1024  }
   0xc   :  { %290 = vsyncadd [#allocation6], 4294966272  ;;  %v206_v0 = vld [vmem:[#allocation5 + $0x38] sm:$0xff]  ;;  %v205_v1 = vld [vmem:[#allocation5 + $0x30] sm:$0xff]  ;;  %s297_s0 = smov [#allocation7]   ;;  %s148_s23 = sshll.u32 %s326_s2, 4  ;;  %s149_s23 = int_to_ptr.hbm [resolvable:$true] %s148_s23 }
   0xd   :  { %124 = vmatpush.bf16.msra.mxu0 %v206_v0  ;;  %v204_v2 = vld [vmem:[#allocation5 + $0x28] sm:$0xff]  ;;  %v203_v3 = vld [vmem:[#allocation5 + $0x20] sm:$0xff]  ;;  %v202_v4 = vld [vmem:[#allocation5 + $0x18] sm:$0xff]  ;;  %s146_s1 = sshll.u32 %s297_s0, 4  ;;  %s298_s24 = smov 128   ;;  %s147_s1 = int_to_ptr.vmem [resolvable:$true] %s146_s1 }
   0xe   :  { %v201_v5 = vld [vmem:[#allocation5 + $0x10] sm:$0xff]  ;;  %v200_v6 = vld [vmem:[#allocation5 + $0x8] sm:$0xff]  ;;  %v199_v7 = vld [vmem:[#allocation5] sm:$0xff]  ;;  %s299_s25 = smov 8  }
   0xf   :  { %v198_v8 = vld [vmem:[#allocation2] sm:$0xff] }
  0x11   :  { %125 = vmatpush.bf16.msra.mxu0 %v205_v1 }
  0x15   :  { %126 = vmatpush.bf16.msra.mxu0 %v204_v2 }
  0x19   :  { %127 = vmatpush.bf16.msra.mxu0 %v203_v3 }
  0x1d   :  { %128 = vmatpush.bf16.msra.mxu0 %v202_v4 }
  0x21   :  { %129 = vmatpush.bf16.msra.mxu0 %v201_v5 }
  0x25   :  { %130 = vmatpush.bf16.msra.mxu0 %v200_v6 }
  0x29   :  { %131 = vmatpush.bf16.msra.mxu0 %v199_v7 }
  0x2c   :  { %132 = vmatmul.bf16.vlgmr.msra.gmra.mxu0 %v198_v8 }
  0xa9   :  { %v133_v9 = vpop.f32.mrf.mxu0 }
  0xaa   :  { %140 = vst [vmem:[#allocation7] sm:$0xff] %v133_v9 }
  0xb1   :  { %v135_v10 = vpop.f32.mrf.mxu0 }
  0xb2   :  { %141 = vst [vmem:[#allocation7 + $0x8] sm:$0xff] %v135_v10 }
  0xb3   :  { %154 = dma.vmem_to_hbm [thread:$0]  %s147_s1, 256, %s149_s23, [#allocation4], %s298_s24, %s298_s24, %s299_s25  }
  0xb4   :  { %291 = dma.done.wait [#allocation4], 256  }
  0xb5   :  { %292 = vsyncadd [#allocation4], 4294967040 }
  0xb6   :  { %159 = vsyncpa [#allocation3], 1 }
  0xb7   :  { %160 = vsyncpa [#allocation6], 1 }
  0xb8   :  { %161 = vsyncpa [#allocation4], 1 }

</bundles_post_ra>
